<compile_context>
chip_gen: v7x
topology: tpu7x:2x2x1
jax: 0.10.0
libtpu: 0.0.40
codegen_flags: <defaults>
</compile_context>

<pallas_src>
import functools

import jax
import jax.numpy as jnp
from jax.experimental import pallas as pl
from jax.experimental.pallas import tpu as pltpu

EPS = 1e-5
_MIB = 1 << 20


# ---------------------------------------------------------------------------
# Kernels
# ---------------------------------------------------------------------------
def _fused_bn_kernel(x_ref, gamma_ref, beta_ref, o_ref, *, inv_m, n_slabs):
    """Single-HBM-sweep BN for one channel tile.

    x_ref / o_ref: (N, c_tile, HW) in the native dtype.  Per-sample slab loops
    keep the f32 temporaries bounded to one (c_tile, HW) slab, which is what
    lets the planner pick large channel tiles without spilling VMEM.
    """
    c_tile = x_ref.shape[1]
    unroll_i = min(n_slabs, 8)          # static python ints at trace time
    unroll_b = n_slabs <= 8
    zeros = jnp.zeros((c_tile, 1), jnp.float32)

    # Sweep 1 (VMEM only): per-channel mean.
    def sum_body(i, s):
        xi = x_ref[i].astype(jnp.float32)                  # (c_tile, HW)
        return s + jnp.sum(xi, axis=1, keepdims=True)

    mean = jax.lax.fori_loop(0, n_slabs, sum_body, zeros, unroll=unroll_i) * inv_m

    # Sweep 2 (VMEM only): centered variance (no E[x^2]-mean^2 cancellation).
    def var_body(i, v):
        d = x_ref[i].astype(jnp.float32) - mean
        return v + jnp.sum(d * d, axis=1, keepdims=True)

    var = jax.lax.fori_loop(0, n_slabs, var_body, zeros, unroll=unroll_i) * inv_m

    inv_std = jax.lax.rsqrt(var + EPS)                     # EUP
    scale = inv_std * gamma_ref[0]                         # (c_tile, 1)
    shift = beta_ref[0] - mean * scale

    # Sweep 3: normalize + affine, written back in the input dtype.
    @pl.loop(0, n_slabs, unroll=unroll_b)
    def _(i):
        xi = x_ref[i].astype(jnp.float32)
        o_ref[i] = (xi * scale + shift).astype(o_ref.dtype)


def _stats_kernel(x_ref, gamma_ref, beta_ref, scale_ref, shift_ref,
                  s_acc, ss_acc, *, inv_m):
    """Two-pass fallback, pass 1: per-channel sum / sumsq accumulated across
    the 'arbitrary' (N, HW) grid axes; fused scale/shift emitted at the end."""
    n_idx, hw_idx = pl.program_id(1), pl.program_id(2)

    @pl.when(jnp.logical_and(n_idx == 0, hw_idx == 0))
    def _():
        s_acc[...] = jnp.zeros_like(s_acc)
        ss_acc[...] = jnp.zeros_like(ss_acc)

    x = x_ref[...].astype(jnp.float32)                     # (n_t, c_t, hw_t)
    s_acc[...] += jnp.sum(x, axis=(0, 2), keepdims=True)
    ss_acc[...] += jnp.sum(x * x, axis=(0, 2), keepdims=True)

    @pl.when(jnp.logical_and(n_idx == pl.num_programs(1) - 1,
                             hw_idx == pl.num_programs(2) - 1))
    def _():
        mean = s_acc[...] * inv_m
        # Per-block f32 partial sums keep accumulation error small; the
        # sum/sumsq form is kept here to stay at 1.5x HBM traffic.
        var = jnp.maximum(ss_acc[...] * inv_m - mean * mean, 0.0)
        inv_std = jax.lax.rsqrt(var + EPS)
        scale = inv_std * gamma_ref[...]
        scale_ref[...] = scale
        shift_ref[...] = beta_ref[...] - mean * scale


def _norm_kernel(x_ref, scale_ref, shift_ref, o_ref):
    """Two-pass fallback, pass 2: elementwise y = x * scale + shift."""
    x = x_ref[...].astype(jnp.float32)
    o_ref[...] = (x * scale_ref[...] + shift_ref[...]).astype(o_ref.dtype)


# ---------------------------------------------------------------------------
# Tiling / VMEM planner
# ---------------------------------------------------------------------------
def _vmem_capacity_bytes():
    try:
        cap = int(getattr(pltpu.get_tpu_info(), "vmem_capacity_bytes"))
        if cap > 0:
            return cap
    except Exception:
        pass
    return 64 << 20  # assume the smallest per-core VMEM (v7x) if unknown


def _min_sublane(itemsize):
    # native second-minor tile: f32 -> 8, bf16 -> 16, int8/fp8 -> 32
    return max(8, 32 // max(int(itemsize), 1))


def _legal_c_tiles(C, itemsize):
    step = _min_sublane(itemsize)
    cands = {C}                                  # full dim is always legal
    for c in range(step, C, step):
        if C % c == 0:
            cands.add(c)
    return sorted(cands)


def _legal_hw_tiles(HW):
    cands = {HW}                                 # full dim is always legal
    for h in range(128, HW, 128):                # lane dim: multiples of 128
        if HW % h == 0:
            cands.add(h)
    return sorted(cands)


def _divisors(n):
    return sorted(d for d in range(1, n + 1) if n % d == 0)


def _pick_c_tile(cands, fits, C):
    """Largest fitting channel tile, preferring >=4 (then >=2) grid steps so
    the 'parallel' axis keeps both v7x TensorCores busy and pipelines."""
    fitting = [c for c in cands if fits(c)]
    if not fitting:
        return None
    for min_steps in (4, 2, 1):
        opts = [c for c in fitting if C // c >= min_steps]
        if opts:
            return max(opts)
    return max(fitting)


def _plan(N, C, HW, itemsize, budget_override=None):
    cap = _vmem_capacity_bytes()
    # Generation-aware buffer budget for this call:
    #   v7x (64 MiB physical) -> 32 MiB; v5e/v6e (128 MiB) -> 48 MiB.
    budget = min(cap // 2, 48 * _MIB)
    if budget_override is not None:
        budget = min(budget, budget_override // 2)

    c_cands = _legal_c_tiles(C, itemsize)

    # -- fused single-sweep plan: block = (N, c_tile, HW) --------------------
    def fused_cost(c):
        blk = N * c * HW
        io = 4 * blk * itemsize          # in + out, double-buffered
        tmp = 4 * c * HW * 4             # slab-bounded f32 temporaries
        return io + tmp + _MIB           # small margin

    c_fused = _pick_c_tile(c_cands, lambda c: fused_cost(c) <= budget, C)
    if c_fused is not None:
        return {"mode": "fused", "c_tile": c_fused, "bytes": fused_cost(c_fused)}

    # -- tiled two-pass plan: block = (n_tile, c_tile, hw_tile) --------------
    hw_cands = _legal_hw_tiles(HW)
    n_cands = _divisors(N)
    hw_min = hw_cands[0]

    def tp_cost(n, c, hw):
        blk = n * c * hw
        return 4 * blk * itemsize + 2 * blk * 4 + _MIB

    c_tp = _pick_c_tile(c_cands, lambda c: tp_cost(1, c, hw_min) <= budget, C)
    if c_tp is None:
        c_tp = c_cands[0]                # smallest legal; limit raised below
    hw_fit = [h for h in hw_cands if tp_cost(1, c_tp, h) <= budget]
    hw_tp = max(hw_fit) if hw_fit else hw_min
    n_fit = [n for n in n_cands if tp_cost(n, c_tp, hw_tp) <= budget]
    n_tp = max(n_fit) if n_fit else 1
    return {"mode": "two_pass", "c_tile": c_tp, "n_tile": n_tp,
            "hw_tile": hw_tp, "bytes": tp_cost(n_tp, c_tp, hw_tp)}


# ---------------------------------------------------------------------------
# Wrapper
# ---------------------------------------------------------------------------
def switchable_batchnorm2d(x_nchw, gamma, beta, *, max_vmem_bytes=None):
    """Training-mode forward of the selected (last / widest) BatchNorm2d.

    x_nchw : (N, C, H, W), any float dtype (kept end-to-end; math in f32)
    gamma, beta : (C,) affine parameters
    Returns (N, C, H, W) in x_nchw.dtype.
    """
    N, C, H, W = x_nchw.shape
    HW = H * W
    M = N * HW
    dtype = x_nchw.dtype
    itemsize = jnp.dtype(dtype).itemsize
    inv_m = 1.0 / M

    # Free reshapes only: no transpose, and no dtype cast of the activation.
    x3 = x_nchw.reshape(N, C, HW)
    gamma3 = gamma.reshape(1, C, 1).astype(jnp.float32)
    beta3 = beta.reshape(1, C, 1).astype(jnp.float32)

    plan = _plan(N, C, HW, itemsize, budget_override=max_vmem_bytes)
    cap = _vmem_capacity_bytes()
    vmem_limit = int(min(int(0.9 * cap), max(32 * _MIB, int(1.5 * plan["bytes"]))))

    if plan["mode"] == "fused":
        c_tile = plan["c_tile"]
        num_c = C // c_tile
        # NOTE: the block lane dim is HW; when H*W < 128 (tiny feature maps)
        # vector ops / stores are partially masked.  Typical conv maps
        # (H*W >= 128) use full lanes except the last partial vreg.
        cost = pl.CostEstimate(
            flops=int(7 * N * C * HW + 10 * C),
            transcendentals=int(C),
            bytes_accessed=int(2 * N * C * HW * itemsize + 3 * C * 4))
        out3 = pl.pallas_call(
            functools.partial(_fused_bn_kernel, inv_m=inv_m, n_slabs=N),
            out_shape=jax.ShapeDtypeStruct((N, C, HW), dtype),
            grid=(num_c,),
            in_specs=[
                pl.BlockSpec((N, c_tile, HW), lambda c: (0, c, 0)),
                pl.BlockSpec((1, c_tile, 1), lambda c: (0, c, 0)),
                pl.BlockSpec((1, c_tile, 1), lambda c: (0, c, 0)),
            ],
            out_specs=pl.BlockSpec((N, c_tile, HW), lambda c: (0, c, 0)),
            compiler_params=pltpu.CompilerParams(
                dimension_semantics=("parallel",),
                vmem_limit_bytes=vmem_limit),
            cost_estimate=cost,
        )(x3, gamma3, beta3)
        return out3.reshape(N, C, H, W)

    # ---- tiled two-pass fallback (block did not fit the VMEM budget) ------
    c_tile, n_tile, hw_tile = plan["c_tile"], plan["n_tile"], plan["hw_tile"]
    num_c, num_n, num_hw = C // c_tile, N // n_tile, HW // hw_tile
    x_spec = pl.BlockSpec((n_tile, c_tile, hw_tile), lambda c, n, h: (n, c, h))
    cvec_spec = pl.BlockSpec((1, c_tile, 1), lambda c, n, h: (0, c, 0))

    stats_cost = pl.CostEstimate(
        flops=int(4 * N * C * HW + 10 * C),
        transcendentals=int(C),
        bytes_accessed=int(N * C * HW * itemsize + 4 * C * 4))
    scale3, shift3 = pl.pallas_call(
        functools.partial(_stats_kernel, inv_m=inv_m),
        out_shape=(jax.ShapeDtypeStruct((1, C, 1), jnp.float32),
                   jax.ShapeDtypeStruct((1, C, 1), jnp.float32)),
        grid=(num_c, num_n, num_hw),
        in_specs=[x_spec, cvec_spec, cvec_spec],
        out_specs=(cvec_spec, cvec_spec),
        scratch_shapes=[pltpu.VMEM((1, c_tile, 1), jnp.float32),
                        pltpu.VMEM((1, c_tile, 1), jnp.float32)],
        compiler_params=pltpu.CompilerParams(
            dimension_semantics=("parallel", "arbitrary", "arbitrary"),
            vmem_limit_bytes=vmem_limit),
        cost_estimate=stats_cost,
    )(x3, gamma3, beta3)

    norm_cost = pl.CostEstimate(
        flops=int(2 * N * C * HW),
        transcendentals=0,
        bytes_accessed=int(2 * N * C * HW * itemsize + 2 * C * 4))
    out3 = pl.pallas_call(
        _norm_kernel,
        out_shape=jax.ShapeDtypeStruct((N, C, HW), dtype),
        grid=(num_c, num_n, num_hw),
        in_specs=[x_spec, cvec_spec, cvec_spec],
        out_specs=x_spec,
        compiler_params=pltpu.CompilerParams(
            dimension_semantics=("parallel", "parallel", "parallel"),
            vmem_limit_bytes=vmem_limit),
        cost_estimate=norm_cost,
    )(x3, scale3, shift3)
    return out3.reshape(N, C, H, W)


# ---------------------------------------------------------------------------
# Demo / self-check
# ---------------------------------------------------------------------------
if __name__ == "__main__":
    # SwitchableBatchNorm2d(num_features_list=[4, 8, 16]) with the default
    # out_choose_list -> forward uses the last BN (16 channels).
    num_features_list = [4, 8, 16]
    selected_features = num_features_list[-1]

    N, C, H, W = 2, selected_features, 8, 8

    key = jax.random.PRNGKey(0)
    kx, kg, kb = jax.random.split(key, 3)
    x = jax.random.normal(kx, (N, C, H, W), dtype=jnp.float32)
    gamma = 1.0 + 0.1 * jax.random.normal(kg, (C,), dtype=jnp.float32)
    beta = 0.1 * jax.random.normal(kb, (C,), dtype=jnp.float32)

    # Pure-JAX reference (training-mode BN, biased variance over N, H, W).
    mean = jnp.mean(x, axis=(0, 2, 3), keepdims=True)
    var = jnp.mean((x - mean) ** 2, axis=(0, 2, 3), keepdims=True)
    y_ref = (x - mean) / jnp.sqrt(var + EPS) * gamma.reshape(1, C, 1, 1) \
        + beta.reshape(1, C, 1, 1)

    # 1) Fused single-sweep path (default plan at this size).
    y = switchable_batchnorm2d(x, gamma, beta)
    jax.block_until_ready(y)
    assert y.shape == (N, C, H, W)
    assert y.dtype == x.dtype
    assert jnp.max(jnp.abs(y - y_ref)) < 1e-4

    # 2) Tiled two-pass fallback path (forced by a tiny VMEM budget).
    y2 = switchable_batchnorm2d(x, gamma, beta, max_vmem_bytes=2 * _MIB)
    jax.block_until_ready(y2)
    assert jnp.max(jnp.abs(y2 - y_ref)) < 1e-4

    # 3) Native-dtype (bf16) path: activation carried end-to-end in bf16.
    xb = x.astype(jnp.bfloat16)
    xb32 = xb.astype(jnp.float32)
    mean_b = jnp.mean(xb32, axis=(0, 2, 3), keepdims=True)
    var_b = jnp.mean((xb32 - mean_b) ** 2, axis=(0, 2, 3), keepdims=True)
    yb_ref = (xb32 - mean_b) / jnp.sqrt(var_b + EPS) * gamma.reshape(1, C, 1, 1) \
        + beta.reshape(1, C, 1, 1)
    yb = switchable_batchnorm2d(xb, gamma, beta)
    jax.block_until_ready(yb)
    assert yb.dtype == jnp.bfloat16
    assert jnp.max(jnp.abs(yb.astype(jnp.float32) - yb_ref)) < 5e-2

    print("KERNEL_OK")
</pallas_src>

<mosaic_0001>
module attributes {stable_mosaic.version = 11 : i64} {
  func.func @_fused_bn_kernel(%arg0: i32, %arg1: memref<2x8x64xf32, #tpu.memory_space<vmem>>, %arg2: memref<1x8x1xf32, #tpu.memory_space<vmem>>, %arg3: memref<1x8x1xf32, #tpu.memory_space<vmem>>, %arg4: memref<2x8x64xf32, #tpu.memory_space<vmem>>) attributes {dimension_semantics = [#tpu.dimension_semantics<parallel>], iteration_bounds = array<i64: 2>, scalar_prefetch = 0 : i64, scratch_operands = 0 : i64, tpu.core_type = #tpu.core_type<tc>, window_params = [{transform_indices = @transform_0, window_bounds = array<i64: 2, 8, 64>}, {transform_indices = @transform_1, window_bounds = array<i64: 1, 8, 1>}, {transform_indices = @transform_2, window_bounds = array<i64: 1, 8, 1>}, {transform_indices = @transform_3, window_bounds = array<i64: 2, 8, 64>}]} {
    %cst = arith.constant 0.000000e+00 : f32
    %0 = vector.broadcast %cst : f32 to vector<8x1xf32>
    %c0_i32 = arith.constant 0 : i32
    %1 = arith.index_cast %c0_i32 : i32 to index
    %c0 = arith.constant 0 : index
    %c0_0 = arith.constant 0 : index
    %2 = vector.load %arg1[%1, %c0, %c0_0] : memref<2x8x64xf32, #tpu.memory_space<vmem>>, vector<1x8x64xf32>
    %3 = vector.shape_cast %2 : vector<1x8x64xf32> to vector<8x64xf32>
    %cst_1 = arith.constant dense<0.000000e+00> : vector<8xf32>
    %4 = vector.multi_reduction <add>, %3, %cst_1 [1] : vector<8x64xf32> to vector<8xf32>
    %5 = vector.shape_cast %4 : vector<8xf32> to vector<8x1xf32>
    %6 = arith.addf %0, %5 : vector<8x1xf32>
    %c1_i32 = arith.constant 1 : i32
    %7 = arith.index_cast %c1_i32 : i32 to index
    %c0_2 = arith.constant 0 : index
    %c0_3 = arith.constant 0 : index
    %8 = vector.load %arg1[%7, %c0_2, %c0_3] : memref<2x8x64xf32, #tpu.memory_space<vmem>>, vector<1x8x64xf32>
    %9 = vector.shape_cast %8 : vector<1x8x64xf32> to vector<8x64xf32>
    %cst_4 = arith.constant dense<0.000000e+00> : vector<8xf32>
    %10 = vector.multi_reduction <add>, %9, %cst_4 [1] : vector<8x64xf32> to vector<8xf32>
    %11 = vector.shape_cast %10 : vector<8xf32> to vector<8x1xf32>
    %12 = arith.addf %6, %11 : vector<8x1xf32>
    %c2_i32 = arith.constant 2 : i32
    %cst_5 = arith.constant 7.812500e-03 : f32
    %13 = vector.broadcast %cst_5 : f32 to vector<8x1xf32>
    %14 = arith.mulf %12, %13 : vector<8x1xf32>
    %c0_i32_6 = arith.constant 0 : i32
    %15 = arith.index_cast %c0_i32_6 : i32 to index
    %c0_7 = arith.constant 0 : index
    %c0_8 = arith.constant 0 : index
    %16 = vector.load %arg1[%15, %c0_7, %c0_8] : memref<2x8x64xf32, #tpu.memory_space<vmem>>, vector<1x8x64xf32>
    %17 = vector.shape_cast %16 : vector<1x8x64xf32> to vector<8x64xf32>
    %18 = vector.broadcast %14 : vector<8x1xf32> to vector<8x64xf32>
    %19 = arith.subf %17, %18 : vector<8x64xf32>
    %20 = arith.mulf %19, %19 : vector<8x64xf32>
    %cst_9 = arith.constant dense<0.000000e+00> : vector<8xf32>
    %21 = vector.multi_reduction <add>, %20, %cst_9 [1] : vector<8x64xf32> to vector<8xf32>
    %22 = vector.shape_cast %21 : vector<8xf32> to vector<8x1xf32>
    %23 = arith.addf %0, %22 : vector<8x1xf32>
    %c1_i32_10 = arith.constant 1 : i32
    %24 = arith.index_cast %c1_i32_10 : i32 to index
    %c0_11 = arith.constant 0 : index
    %c0_12 = arith.constant 0 : index
    %25 = vector.load %arg1[%24, %c0_11, %c0_12] : memref<2x8x64xf32, #tpu.memory_space<vmem>>, vector<1x8x64xf32>
    %26 = vector.shape_cast %25 : vector<1x8x64xf32> to vector<8x64xf32>
    %27 = vector.broadcast %14 : vector<8x1xf32> to vector<8x64xf32>
    %28 = arith.subf %26, %27 : vector<8x64xf32>
    %29 = arith.mulf %28, %28 : vector<8x64xf32>
    %cst_13 = arith.constant dense<0.000000e+00> : vector<8xf32>
    %30 = vector.multi_reduction <add>, %29, %cst_13 [1] : vector<8x64xf32> to vector<8xf32>
    %31 = vector.shape_cast %30 : vector<8xf32> to vector<8x1xf32>
    %32 = arith.addf %23, %31 : vector<8x1xf32>
    %c2_i32_14 = arith.constant 2 : i32
    %cst_15 = arith.constant 7.812500e-03 : f32
    %33 = vector.broadcast %cst_15 : f32 to vector<8x1xf32>
    %34 = arith.mulf %32, %33 : vector<8x1xf32>
    %cst_16 = arith.constant 9.99999974E-6 : f32
    %35 = vector.broadcast %cst_16 : f32 to vector<8x1xf32>
    %36 = arith.addf %34, %35 : vector<8x1xf32>
    %37 = math.rsqrt %36 : vector<8x1xf32>
    %c0_17 = arith.constant 0 : index
    %c0_18 = arith.constant 0 : index
    %c0_19 = arith.constant 0 : index
    %38 = vector.load %arg2[%c0_17, %c0_18, %c0_19] : memref<1x8x1xf32, #tpu.memory_space<vmem>>, vector<1x8x1xf32>
    %39 = vector.shape_cast %38 : vector<1x8x1xf32> to vector<8x1xf32>
    %40 = arith.mulf %37, %39 : vector<8x1xf32>
    %c0_20 = arith.constant 0 : index
    %c0_21 = arith.constant 0 : index
    %c0_22 = arith.constant 0 : index
    %41 = vector.load %arg3[%c0_20, %c0_21, %c0_22] : memref<1x8x1xf32, #tpu.memory_space<vmem>>, vector<1x8x1xf32>
    %42 = vector.shape_cast %41 : vector<1x8x1xf32> to vector<8x1xf32>
    %43 = arith.mulf %14, %40 : vector<8x1xf32>
    %44 = arith.subf %42, %43 : vector<8x1xf32>
    %c0_i32_23 = arith.constant 0 : i32
    %c1_i32_24 = arith.constant 1 : i32
    %45 = arith.muli %c0_i32_23, %c1_i32_24 : i32
    %c0_i32_25 = arith.constant 0 : i32
    %46 = arith.addi %c0_i32_25, %45 : i32
    %47 = arith.index_cast %46 : i32 to index
    %c0_26 = arith.constant 0 : index
    %c0_27 = arith.constant 0 : index
    %48 = vector.load %arg1[%47, %c0_26, %c0_27] : memref<2x8x64xf32, #tpu.memory_space<vmem>>, vector<1x8x64xf32>
    %49 = vector.shape_cast %48 : vector<1x8x64xf32> to vector<8x64xf32>
    %50 = vector.broadcast %40 : vector<8x1xf32> to vector<8x64xf32>
    %51 = arith.mulf %49, %50 : vector<8x64xf32>
    %52 = vector.broadcast %44 : vector<8x1xf32> to vector<8x64xf32>
    %53 = arith.addf %51, %52 : vector<8x64xf32>
    %54 = arith.index_cast %46 : i32 to index
    %c0_28 = arith.constant 0 : index
    %c0_29 = arith.constant 0 : index
    %55 = vector.load %arg4[%54, %c0_28, %c0_29] : memref<2x8x64xf32, #tpu.memory_space<vmem>>, vector<1x8x64xf32>
    %56 = vector.shape_cast %55 : vector<1x8x64xf32> to vector<8x64xf32>
    %57 = vector.shape_cast %53 : vector<8x64xf32> to vector<1x8x64xf32>
    tpu.vector_store %arg4[%54, %c0_28, %c0_29], %57 {strides = array<i32>} : memref<2x8x64xf32, #tpu.memory_space<vmem>>, vector<1x8x64xf32>,
    %c1_i32_30 = arith.constant 1 : i32
    %c1_i32_31 = arith.constant 1 : i32
    %58 = arith.muli %c1_i32_30, %c1_i32_31 : i32
    %c0_i32_32 = arith.constant 0 : i32
    %59 = arith.addi %c0_i32_32, %58 : i32
    %60 = arith.index_cast %59 : i32 to index
    %c0_33 = arith.constant 0 : index
    %c0_34 = arith.constant 0 : index
    %61 = vector.load %arg1[%60, %c0_33, %c0_34] : memref<2x8x64xf32, #tpu.memory_space<vmem>>, vector<1x8x64xf32>
    %62 = vector.shape_cast %61 : vector<1x8x64xf32> to vector<8x64xf32>
    %63 = vector.broadcast %40 : vector<8x1xf32> to vector<8x64xf32>
    %64 = arith.mulf %62, %63 : vector<8x64xf32>
    %65 = vector.broadcast %44 : vector<8x1xf32> to vector<8x64xf32>
    %66 = arith.addf %64, %65 : vector<8x64xf32>
    %67 = arith.index_cast %59 : i32 to index
    %c0_35 = arith.constant 0 : index
    %c0_36 = arith.constant 0 : index
    %68 = vector.load %arg4[%67, %c0_35, %c0_36] : memref<2x8x64xf32, #tpu.memory_space<vmem>>, vector<1x8x64xf32>
    %69 = vector.shape_cast %68 : vector<1x8x64xf32> to vector<8x64xf32>
    %70 = vector.shape_cast %66 : vector<8x64xf32> to vector<1x8x64xf32>
    tpu.vector_store %arg4[%67, %c0_35, %c0_36], %70 {strides = array<i32>} : memref<2x8x64xf32, #tpu.memory_space<vmem>>, vector<1x8x64xf32>,
    %c2_i32_37 = arith.constant 2 : i32
    return
  }
  func.func @transform_0(%arg0: i32) -> (i32, i32, i32) {
    %c0_i32 = arith.constant 0 : i32
    %c0_i32_0 = arith.constant 0 : i32
    %c0_i32_1 = arith.constant 0 : i32
    return %c0_i32, %arg0, %c0_i32_0 : i32, i32, i32
  }
  func.func @transform_1(%arg0: i32) -> (i32, i32, i32) {
    %c0_i32 = arith.constant 0 : i32
    %c0_i32_0 = arith.constant 0 : i32
    %c0_i32_1 = arith.constant 0 : i32
    return %c0_i32, %arg0, %c0_i32_0 : i32, i32, i32
  }
  func.func @transform_2(%arg0: i32) -> (i32, i32, i32) {
    %c0_i32 = arith.constant 0 : i32
    %c0_i32_0 = arith.constant 0 : i32
    %c0_i32_1 = arith.constant 0 : i32
    return %c0_i32, %arg0, %c0_i32_0 : i32, i32, i32
  }
  func.func @transform_3(%arg0: i32) -> (i32, i32, i32) {
    %c0_i32 = arith.constant 0 : i32
    %c0_i32_0 = arith.constant 0 : i32
    %c0_i32_1 = arith.constant 0 : i32
    return %c0_i32, %arg0, %c0_i32_0 : i32, i32, i32
  }
}

</mosaic_0001>

<bundles_post_ra>
// kernel: tpu_custom_call.1
= control target key start
LH: loop header
LB: loop body
LE: loop exit
PB: predicated region body
PF: predicated region fallthrough
CT: control target
= control target key end

     0   :  { %8 = vsyncpa [#allocation4], 0  ;;  %s680_s0 = inlined_call_operand.vmem [shape: f32[2,16,64], index: 0, kind: input, shape index: {}]   ;;  %s681_s1 = inlined_call_operand.vmem [shape: f32[1,16,1], index: 1, kind: input, shape index: {}]   ;;  %s682_s2 = inlined_call_operand.vmem [shape: f32[1,16,1], index: 2, kind: input, shape index: {}]   ;;  %s683_s3 = inlined_call_operand.hbm [shape: f32[2,16,64], index: 3, kind: output, shape index: {}]  }
   0x1   :  { %10 = vsyncpa [#allocation4 + $0x1], 0  ;;  %s550_s12 = smov 0   ;;  %s552_s13 = smov 0  }
   0x2   :  { %s554_s14 = smov 0   ;;  %s556_s15 = smov 0  }
   0x3 LB: > { %s571_s16 = sadd.s32 4294967295, %s523_s15   ;;  %s397_s17 = sadd.s32 4294967294, %s523_s15   ;;  %s523_s15 = sphi %s556_s15, %s689_s15   ;;  %s519_s14 = sphi %s554_s14, %s688_s14   ;;  %s515_s13 = sphi %s552_s13, %s687_s13   ;;  %s511_s12 = sphi %s550_s12, %s686_s12  }
   0x4   : > { %s575_s18 = sadd.s32 1, %s523_s15   ;;  %s23_s19 = sadd.s32 1, %s519_s14 }
   0x5   : > { %s20_s20 = ssub.s32 %s523_s15, %s575_s18  ;;  %p30_p0 = scmp.ne.s32.totalorder %s519_s14, %s515_s13 }
   0x6   : > { %p21_p1 = scmp.eq.s32.totalorder %s20_s20, 0  ;;  %p31_p2 = scmp.eq.s32.totalorder %s523_s15, 0 }
   0x7   : > { %p112_p3 = scmp.eq.s32.totalorder %s571_s16, 1  ;;  %p117_p4 = scmp.ne.s32.totalorder %s515_s13, %s511_s12 }
   0x8   : > { %s587_s21 = scalar_select %p21_p1, %s519_s14, %s23_s19  }
   0x9   : > { %p32_p5 = por %p31_p2, %p30_p0  ;;  %p589_p6 = por %p112_p3, %p30_p0 }
   0xa   : > { %p118_p7 = scmp.eq.s32.totalorder %s397_s17, 1  ;;  %p399_p9 = scmp.ge.s32.totalorder %s523_s15, 2 }
   0xc   : > { %p593_p8 = por %p118_p7, %p117_p4  ;;  %134 = sbr.rel (%p399_p9) target bundleno = 26 (0x1a), region = 16 }
  0x13   : > { %137 = sbr.rel (!%p32_p5) target bundleno = 26 (0x1a), region = 20  ;;  %s139_s24 = sand.u32 (%p32_p5), 1, %s519_s14  }
  0x14   : > { %s401_s25 = sshll.u32 (%p32_p5), %s523_s15, 3  ;;  %s400_s26 = sshll.u32 (%p32_p5), %s139_s24, 4 }
  0x15   : > { %s143_s29 = scalar_lea.vmem (%p32_p5), %s680_s0, %s401_s25  ;;  %s141_s30 = scalar_lea.vmem (%p32_p5), [#allocation2], %s400_s26 }
  0x16   : > { %v173_v0 = vld [vmem:[%s143_s29] sm:$0xff] (%p32_p5)  ;;  %v175_v1 = vld [vmem:[%s143_s29 + $0x10] sm:$0xff] (%p32_p5) }
  0x17   : > { %174 = vst [vmem:[%s141_s30] sm:$0xff] (%p32_p5), %v173_v0  ;;  %176 = vst [vmem:[%s141_s30 + $0x8] sm:$0xff] (%p32_p5), %v175_v1 }
  0x1a PF: > { %p402_p10 = scmp.ge.s32.totalorder %s523_s15, 1  ;;  %p195_p11 = scmp.lt.s32.totalorder %s523_s15, 3 }
  0x1c   : > { %p196_p12 = pnand %p402_p10, %p195_p11 }
  0x1d   : > { %s202_s4 = sand.u32 (!%p196_p12), 1, %s515_s13   ;;  %vm242_vm0 = vcmask (!%p196_p12), 523264   ;;  %v525_v16 = vmov (!%p196_p12), 0   ;;  %p233_p13 = scmp.lt.s32.totalorder (!%p196_p12), %s571_s16, 1 }
  0x1e   : > { %199 = sbr.rel (%p196_p12) target bundleno = 504 (0x1f8), region = 66  ;;  %s610_s5 = sshll.u32 (!%p196_p12), %s202_s4, 4  ;;  %457 = vset.pattern.permute.xlu0 (!%p196_p12), %v525_v16  ;;  %458 = vset.pattern.permute.xlu1 (!%p196_p12), %v525_v16 }
  0x1f   : > { %s204_s6 = scalar_lea.vmem (!%p196_p12), [#allocation2], %s610_s5  ;;  %s232_s24 = scalar_lea.vmem (!%p196_p12), [#allocation3], %s610_s5 }
  0x20   : > { %v241_v2 = vld [vmem:[%s204_s6] sm:$0xff] (!%p196_p12)  ;;  %v407_v3 = vld [vmem:[%s204_s6 + $0x8] sm:$0xff] (!%p196_p12)  ;;  %s305_s25 = sshll.u32 (!%p196_p12), %s232_s24, 4  ;;  %s411_s26 = sshll.u32 (!%p196_p12), %s571_s16, 7  ;;  %s627_s25 = int_to_ptr.vmem [resolvable:$true] %s305_s25 }
  0x21   : > { %v243_v4 = vsel (!%p196_p12), %vm242_vm0, %v241_v2, 0.0  ;;  %v249_v5 = vsel (!%p196_p12), %vm242_vm0, %v407_v3, 0.0  ;;  %s632_s29 = scalar_lea.hbm (!%p196_p12), %s683_s3, %s411_s26  ;;  %s461_s30 = scalar_lea.vmem (!%p196_p12), %s627_s25, 256 }
  0x22   : > { %244 = vadd.xlane.f32.xlu0 (!%p196_p12), %v243_v4  ;;  %p462_p0 = scmp.ne.s32.totalorder (!%p196_p12), %s627_s25, %s461_s30  ;;  %s526_s5 = smov (!%p196_p12), [#allocation3]  }
  0x23   : > { %s465_s6 = sshll.u32 (!%p196_p12), %s526_s5, 4  ;;  %s466_s6 = int_to_ptr.vmem [resolvable:$false] %s465_s6 }
  0x24   : > { %p463_p1 = pnand (!%p196_p12), %p462_p0, %p589_p6  ;;  %p468_p3 = scmp.lt.s32.totalorder (!%p196_p12), %s627_s25, %s466_s6 }
  0x25   : > { %s234_s7 = scalar_select %p233_p13, %s571_s16, 1 }
  0x26   : > { %250 = vadd.xlane.f32.xlu0 %v249_v5  ;;  %s638_s16 = scalar_lea.sflag [#allocation4], %s202_s4  ;;  %p464_p2 = pneg %p463_p1 }
  0x27   : > { %s405_s8 = sshll.u32 %s234_s7, 3  ;;  %s467_s7 = scalar_lea.vmem %s466_s6, 512 }
  0x28   : > { %s236_s11 = scalar_lea.vmem %s681_s1, %s405_s8  ;;  %s240_s20 = scalar_lea.vmem %s682_s2, %s405_s8 }
  0x29   : > { %v269_v22 = vld [vmem:[%s236_s11] sm:$0xff]  ;;  %p469_p4 = scmp.lt.s32.totalorder %s467_s7, %s461_s30 }
  0x2a   : > { %v271_v25 = vld [vmem:[%s240_s20] sm:$0xff] }
  0x2b   : > { %p470_p5 = por %p469_p4, %p468_p3 }
  0x2d   : > { %p471_p7 = pnand %p470_p5, %p464_p2 }
  0xaf   : > { %v245_v6 = vpop.xlane.xlu0 %244 }
  0xb3   : > { %v251_v7 = vpop.xlane.xlu0 %250 }
  0xb4   : > { %v252_v8 = vadd.f32 %v251_v7, %v245_v6 }
  0xb6   : > { %v253_v9 = vmul.f32 0.0078125, %v252_v8 }
  0xb8   : > { %v254_v10 = vsub.f32 %v241_v2, %v253_v9  ;;  %v260_v11 = vsub.f32 %v407_v3, %v253_v9 }
  0xba   : > { %v255_v12 = vmul.f32 %v254_v10, %v254_v10  ;;  %v261_v14 = vmul.f32 %v260_v11, %v260_v11 }
  0xbc   : > { %v256_v13 = vsel %vm242_vm0, %v255_v12, 0.0  ;;  %v262_v15 = vsel %vm242_vm0, %v261_v14, 0.0 }
  0xbd   : > { %257 = vadd.xlane.f32.xlu1 %v256_v13 }
  0xc1   : > { %263 = vadd.xlane.f32.xlu1 %v262_v15 }
 0x14a   : > { %v258_v17 = vpop.xlane.xlu1 %257 }
 0x14e   : > { %v264_v18 = vpop.xlane.xlu1 %263 }
 0x14f   : > { %v265_v19 = vadd.f32 %v264_v18, %v258_v17 }
 0x151   : > { %v266_v20 = vmul.f32 0.0078125, %v265_v19 }
 0x153   : > { %v267_v21 = vadd.f32 1e-05, %v266_v20 }
 0x155   : > { %459 = vrsqrt.f32 %v267_v21 }
 0x15f   : > { %v460_v23 = vpop.eup %459 }
 0x160   : > { %v270_v24 = vmul.f32 %v460_v23, %v269_v22 }
 0x162   : > { %276 = vperm.xlu0 %457, %v270_v24   ;;  %v272_v26 = vmul.f32 %v270_v24, %v253_v9 }
 0x164   : > { %v273_v27 = vsub.f32 %v271_v25, %v272_v26 }
 0x166   : > { %282 = vperm.xlu1 %458, %v273_v27  }
 0x1e1   : > { %v277_v28 = vpop.permute.xlu0 %276 }
 0x1e2   : > { %v279_v29 = vmul.f32 %v277_v28, %v241_v2  ;;  %v288_v30 = vmul.f32 %v407_v3, %v277_v28 }
 0x1e5   : > { %v283_v31 = vpop.permute.xlu1 %282 }
 0x1e6   : > { %v285_v32 = vadd.f32 %v283_v31, %v279_v29  ;;  %v289_v33 = vadd.f32 %v288_v30, %v283_v31 }
 0x1e8   : > { %286 = vst.msk [vmem:[%s232_s24] sm:$0xff] %vm242_vm0, %v285_v32  ;;  %409 = vst.msk [vmem:[%s232_s24 + $0x8] sm:$0xff] %vm242_vm0, %v289_v33 }
 0x1e9   : > { %474 = shalt.err (!%p471_p7)
}
 0x1ea   : > { %s475_s4 = scalar_lea.hbm %s632_s29, 256  ;;  %s479_s10 = scalar_lea.hbm %s683_s3, 512 }
 0x1eb   : > { %p476_p10 = scmp.ne.s32.totalorder %s632_s29, %s475_s4  ;;  %p480_p13 = scmp.lt.u32.totalorder %s632_s29, %s683_s3 }
 0x1ec   : > { %p481_p0 = scmp.lt.u32.totalorder %s479_s10, %s475_s4  ;;  %p483_p2 = scmp.lt.u32.totalorder %s475_s4, %s632_s29 }
 0x1ed   : > { %p477_p11 = pnand %p476_p10, %p589_p6 }
 0x1ee   : > { %p482_p1 = por %p481_p0, %p480_p13 }
 0x1ef   : > { %p478_p12 = pneg %p477_p11 }
 0x1f0   : > { %p484_p3 = por %p483_p2, %p482_p1 }
 0x1f2   : > { %p485_p4 = pnand %p484_p3, %p478_p12 }
 0x1f4   : > { %488 = shalt.err (!%p485_p4)
}
 0x1f5   : > { %s527_s19 = smov 128   ;;  %s528_s20 = smov 256  }
 0x1f6   : > { %s529_s24 = smov 8  }
 0x1f7   : > { %414 = dma.vmem_to_hbm [thread:$0]  (%p589_p6), %s627_s25, 256, %s632_s29, %s638_s16, %s527_s19, %s528_s20, %s529_s24  }
 0x1f8 PF: > { %s320_s26 = sand.u32 1, %s511_s12   ;;  %p417_p5 = pnand %p399_p9, %p593_p8 }
 0x1f9   : > { %s321_s27 = scalar_lea.sflag [#allocation4], %s320_s26 }
 0x1fa   : > { %506 = dma.done.wait (!%p417_p5), %s321_s27, 256  }
 0x1fb   : > { %508 = vsyncadd (!%p417_p5), %s321_s27, 4294967040  ;;  %p13_p7 = scmp.ge.s32.totalorder %s575_s18, 4   ;;  %s686_s12 = smov %s515_s13 }
 0x1fc   : > { %s687_s13 = smov %s519_s14  ;;  %s688_s14 = smov %s587_s21 }
 0x1fd   : > { %s689_s15 = smov %s575_s18  ;;  %15 = sbr.rel (!%p13_p7) target bundleno = 3 (0x3), region = 118 }
 0x204   :  { %326 = vsyncpa [#allocation4], 1 }
 0x205   :  { %328 = vsyncpa [#allocation4 + $0x1], 1 }

</bundles_post_ra>
